<compile_context>
chip_gen: v5e
topology: v5e:2x2
jax: 0.10.0
libtpu: 0.0.40
codegen_flags: <defaults>
</compile_context>

<pallas_src>
import functools
import math
import warnings

import jax
import jax.numpy as jnp
from jax.experimental import pallas as pl
from jax.experimental.pallas import tpu as pltpu

_EPS = 1e-5  # PyTorch nn.LayerNorm default eps


def _ln_residual_kernel(x_ref, gamma_ref, beta_ref, o_ref):
    # x_ref: (tile_rows, H) tile in VMEM; gamma/beta: (1, H) f32, VMEM-resident.
    xf = x_ref[...].astype(jnp.float32)
    inv_h = jnp.float32(1.0 / x_ref.shape[-1])
    mean = jnp.sum(xf, axis=-1, keepdims=True) * inv_h
    xc = xf - mean
    var = jnp.sum(xc * xc, axis=-1, keepdims=True) * inv_h  # biased, as in PyTorch
    inv_std = jax.lax.rsqrt(var + _EPS)
    o_ref[...] = (xc * inv_std * gamma_ref[...] + beta_ref[...] + xf).astype(o_ref.dtype)


def _round_up(n, m):
    return -(-n // m) * m


def _choose_tiling(rows, hidden, itemsize):
    """Byte-targeted (tile_rows, vmem_limit_bytes)."""
    try:
        # 128 MiB on v5e/v6e, 64 MiB per TensorCore on v7x.
        vmem_cap = pltpu.get_tpu_info().vmem_capacity_bytes
    except Exception:
        vmem_cap = 64 * 1024 * 1024

    sub = 8 * max(1, 4 // itemsize)            # sublane multiple for the dtype
    row_bytes = hidden * itemsize
    # VMEM cost per tile row: double-buffered in + out (native dtype) plus
    # ~3 f32 working copies for the upcast math.
    vmem_row_cost = 4 * row_bytes + 3 * hidden * 4

    target_tile_bytes = 4 * 1024 * 1024        # ~4 MiB of input per tile (cap ~8 MiB)
    tile_rows = max(sub, target_tile_bytes // max(row_bytes, 1))
    tile_rows = min(tile_rows, max(sub, int(vmem_cap * 0.6) // vmem_row_cost))
    tile_rows = max(sub, (tile_rows // sub) * sub)

    rows_rounded = _round_up(rows, sub)
    tile_rows = min(tile_rows, rows_rounded)

    # Keep an even grid count (>= 2) when there is enough work: v7x has two
    # TensorCores and a 1-step / odd-step grid leaves one idle or imbalanced.
    steps = -(-rows // tile_rows)
    if steps % 2 == 1 and rows_rounded > sub:
        steps += 1
        tile_rows = max(sub, _round_up(-(-rows // steps), sub))

    footprint = tile_rows * vmem_row_cost + 4 * hidden * 4
    vmem_limit = int(min(vmem_cap, max(2 * footprint, 16 * 1024 * 1024)))
    return tile_rows, vmem_limit


def _residual_norm_impl(x, gamma, beta, *, alias_input):
    orig_shape = x.shape
    hidden = orig_shape[-1]
    rows = math.prod(orig_shape[:-1]) if len(orig_shape) > 1 else 1
    tile_rows, vmem_limit = _choose_tiling(rows, hidden, jnp.dtype(x.dtype).itemsize)

    x2d = x.reshape(rows, hidden)                      # bitcast inside jit
    gamma2d = gamma.reshape(1, hidden).astype(jnp.float32)
    beta2d = beta.reshape(1, hidden).astype(jnp.float32)

    out2d = pl.pallas_call(
        _ln_residual_kernel,
        out_shape=jax.ShapeDtypeStruct((rows, hidden), x.dtype),
        grid_spec=pltpu.PrefetchScalarGridSpec(
            num_scalar_prefetch=0,
            grid=(pl.cdiv(rows, tile_rows),),          # ragged last block is fine
            in_specs=[
                pl.BlockSpec((tile_rows, hidden), lambda i: (i, 0)),
                pl.BlockSpec((1, hidden), lambda i: (0, 0)),
                pl.BlockSpec((1, hidden), lambda i: (0, 0)),
            ],
            out_specs=pl.BlockSpec((tile_rows, hidden), lambda i: (i, 0)),
        ),
        compiler_params=pltpu.CompilerParams(
            dimension_semantics=("parallel",),
            vmem_limit_bytes=vmem_limit,
        ),
        input_output_aliases={0: 0} if alias_input else {},
    )(x2d, gamma2d, beta2d)
    return out2d.reshape(orig_shape)


@jax.jit
def _residual_norm(x, gamma, beta):
    return _residual_norm_impl(x, gamma, beta, alias_input=False)


@functools.partial(jax.jit, donate_argnums=(0,))
def _residual_norm_donated(x, gamma, beta):
    return _residual_norm_impl(x, gamma, beta, alias_input=True)


def residual_norm_layer(x, gamma, beta, *, donate=False):
    """out = LayerNorm(x; gamma, beta, eps=1e-5) + x over the last dim.

    donate=True writes the output into x's HBM buffer (x is consumed)."""
    if donate:
        return _residual_norm_donated(x, gamma, beta)
    return _residual_norm(x, gamma, beta)


def _reference(x, gamma, beta):
    xf = x.astype(jnp.float32)
    mean = jnp.mean(xf, axis=-1, keepdims=True)
    var = jnp.mean((xf - mean) ** 2, axis=-1, keepdims=True)
    xn = (xf - mean) / jnp.sqrt(var + _EPS)
    return (xn * gamma + beta + xf).astype(x.dtype)


if __name__ == "__main__":
    # Donation-related notices (if any) are informational; keep stdout clean.
    warnings.filterwarnings("ignore", message=".*[Dd]onat.*")

    key = jax.random.PRNGKey(0)
    kx1, kx2, kg, kb = jax.random.split(key, 4)

    hidden = 128  # LayerNorm(size) with size = hidden (lane-dense)
    gamma = jnp.ones((hidden,), jnp.float32) + 0.1 * jax.random.normal(kg, (hidden,), jnp.float32)
    beta = 0.1 * jax.random.normal(kb, (hidden,), jnp.float32)

    # Case 1: rows divide the tile evenly (non-donated path).
    x1 = jax.random.normal(kx1, (2, 8, hidden), dtype=jnp.float32)
    ref1 = _reference(x1, gamma, beta)
    out1 = jax.block_until_ready(residual_norm_layer(x1, gamma, beta))
    assert out1.shape == x1.shape
    assert jnp.allclose(out1, ref1, atol=1e-5, rtol=1e-5), "mismatch vs reference (even case)"

    # Case 2: ragged last block (rows = 15 not divisible by tile_rows) using the
    # donated / output-aliased path.  Reference is computed first; x2 is consumed.
    x2 = jax.random.normal(kx2, (3, 5, hidden), dtype=jnp.float32)
    ref2 = jax.block_until_ready(_reference(x2, gamma, beta))
    out2 = jax.block_until_ready(residual_norm_layer(x2, gamma, beta, donate=True))
    assert out2.shape == ref2.shape
    assert jnp.allclose(out2, ref2, atol=1e-5, rtol=1e-5), "mismatch vs reference (ragged/donated case)"

    print("KERNEL_OK")
</pallas_src>

<mosaic_0001>
module attributes {stable_mosaic.version = 11 : i64} {
  func.func @_ln_residual_kernel(%arg0: i32, %arg1: memref<8x128xf32, #tpu.memory_space<vmem>>, %arg2: memref<1x128xf32, #tpu.memory_space<vmem>>, %arg3: memref<1x128xf32, #tpu.memory_space<vmem>>, %arg4: memref<8x128xf32, #tpu.memory_space<vmem>>) attributes {dimension_semantics = [#tpu.dimension_semantics<parallel>], iteration_bounds = array<i64: 2>, scalar_prefetch = 0 : i64, scratch_operands = 0 : i64, tpu.core_type = #tpu.core_type<tc>, window_params = [{transform_indices = @transform_0, window_bounds = array<i64: 8, 128>}, {pipeline_mode = #tpu.pipeline_mode<synchronous>, transform_indices = @transform_1, window_bounds = array<i64: 1, 128>}, {pipeline_mode = #tpu.pipeline_mode<synchronous>, transform_indices = @transform_2, window_bounds = array<i64: 1, 128>}, {transform_indices = @transform_3, window_bounds = array<i64: 8, 128>}]} {
    %c0 = arith.constant 0 : index
    %c0_0 = arith.constant 0 : index
    %0 = vector.load %arg1[%c0, %c0_0] : memref<8x128xf32, #tpu.memory_space<vmem>>, vector<8x128xf32>
    %cst = arith.constant dense<0.000000e+00> : vector<8xf32>
    %1 = vector.multi_reduction <add>, %0, %cst [1] : vector<8x128xf32> to vector<8xf32>
    %2 = vector.shape_cast %1 : vector<8xf32> to vector<8x1xf32>
    %cst_1 = arith.constant 7.812500e-03 : f32
    %3 = vector.broadcast %cst_1 : f32 to vector<8x1xf32>
    %4 = arith.mulf %2, %3 : vector<8x1xf32>
    %5 = vector.broadcast %4 : vector<8x1xf32> to vector<8x128xf32>
    %6 = arith.subf %0, %5 : vector<8x128xf32>
    %7 = arith.mulf %6, %6 : vector<8x128xf32>
    %cst_2 = arith.constant dense<0.000000e+00> : vector<8xf32>
    %8 = vector.multi_reduction <add>, %7, %cst_2 [1] : vector<8x128xf32> to vector<8xf32>
    %9 = vector.shape_cast %8 : vector<8xf32> to vector<8x1xf32>
    %cst_3 = arith.constant 7.812500e-03 : f32
    %10 = vector.broadcast %cst_3 : f32 to vector<8x1xf32>
    %11 = arith.mulf %9, %10 : vector<8x1xf32>
    %cst_4 = arith.constant 9.99999974E-6 : f32
    %12 = vector.broadcast %cst_4 : f32 to vector<8x1xf32>
    %13 = arith.addf %11, %12 : vector<8x1xf32>
    %14 = math.rsqrt %13 : vector<8x1xf32>
    %15 = vector.broadcast %14 : vector<8x1xf32> to vector<8x128xf32>
    %16 = arith.mulf %6, %15 : vector<8x128xf32>
    %c0_5 = arith.constant 0 : index
    %c0_6 = arith.constant 0 : index
    %17 = vector.load %arg2[%c0_5, %c0_6] : memref<1x128xf32, #tpu.memory_space<vmem>>, vector<1x128xf32>
    %18 = vector.broadcast %17 : vector<1x128xf32> to vector<8x128xf32>
    %19 = arith.mulf %16, %18 : vector<8x128xf32>
    %c0_7 = arith.constant 0 : index
    %c0_8 = arith.constant 0 : index
    %20 = vector.load %arg3[%c0_7, %c0_8] : memref<1x128xf32, #tpu.memory_space<vmem>>, vector<1x128xf32>
    %21 = vector.broadcast %20 : vector<1x128xf32> to vector<8x128xf32>
    %22 = arith.addf %19, %21 : vector<8x128xf32>
    %23 = arith.addf %22, %0 : vector<8x128xf32>
    %c0_9 = arith.constant 0 : index
    %c0_10 = arith.constant 0 : index
    %24 = vector.load %arg4[%c0_9, %c0_10] : memref<8x128xf32, #tpu.memory_space<vmem>>, vector<8x128xf32>
    tpu.vector_store %arg4[%c0_9, %c0_10], %23 {strides = array<i32>} : memref<8x128xf32, #tpu.memory_space<vmem>>, vector<8x128xf32>,
    return
  }
  func.func @transform_0(%arg0: i32) -> (i32, i32) {
    %c0_i32 = arith.constant 0 : i32
    %c0_i32_0 = arith.constant 0 : i32
    return %arg0, %c0_i32 : i32, i32
  }
  func.func @transform_1(%arg0: i32) -> (i32, i32) {
    %c0_i32 = arith.constant 0 : i32
    %c0_i32_0 = arith.constant 0 : i32
    %c0_i32_1 = arith.constant 0 : i32
    return %c0_i32, %c0_i32_0 : i32, i32
  }
  func.func @transform_2(%arg0: i32) -> (i32, i32) {
    %c0_i32 = arith.constant 0 : i32
    %c0_i32_0 = arith.constant 0 : i32
    %c0_i32_1 = arith.constant 0 : i32
    return %c0_i32, %c0_i32_0 : i32, i32
  }
  func.func @transform_3(%arg0: i32) -> (i32, i32) {
    %c0_i32 = arith.constant 0 : i32
    %c0_i32_0 = arith.constant 0 : i32
    return %arg0, %c0_i32 : i32, i32
  }
}

</mosaic_0001>

<bundles_post_ra>
// kernel: _residual_norm.1
= control target key start
LH: loop header
LB: loop body
LE: loop exit
PB: predicated region body
PF: predicated region fallthrough
CT: control target
= control target key end

     0   :  { %8 = vsyncpa [#allocation3], 0  ;;  %s624_s0 = inlined_call_operand.hbm [shape: f32[16,128], index: 0, kind: input, shape index: {}]   ;;  %s625_s1 = inlined_call_operand.vmem [shape: f32[1,128], index: 1, kind: input, shape index: {}]   ;;  %s626_s2 = inlined_call_operand.vmem [shape: f32[1,128], index: 2, kind: input, shape index: {}]   ;;  %s627_s3 = inlined_call_operand.hbm [shape: f32[16,128], index: 3, kind: output, shape index: {}]  }
   0x1   :  { %10 = vsyncpa [#allocation3 + $0x1], 0 }
   0x2   :  { %11 = vsyncpa [#allocation4], 0 }
   0x3   :  { %13 = vsyncpa [#allocation4 + $0x1], 0  ;;  %s487_s12 = smov 0   ;;  %s489_s13 = smov 0  }
   0x4   :  { %s491_s14 = smov 0   ;;  %s493_s15 = smov 0  }
   0x5 LB: > { %s508_s16 = sadd.s32 4294967295, %s465_s15   ;;  %s307_s17 = sadd.s32 4294967294, %s465_s15   ;;  %s465_s15 = sphi %s493_s15, %s637_s15   ;;  %s461_s14 = sphi %s491_s14, %s636_s14   ;;  %s457_s13 = sphi %s489_s13, %s635_s13   ;;  %s453_s12 = sphi %s487_s12, %s634_s12  }
   0x6   : > { %s512_s18 = sadd.s32 1, %s465_s15   ;;  %s26_s19 = sadd.s32 1, %s461_s14 }
   0x7   : > { %s23_s20 = ssub.s32 %s465_s15, %s512_s18  ;;  %p33_p0 = scmp.ne.s32.totalorder %s461_s14, %s457_s13 }
   0x8   : > { %p24_p1 = scmp.eq.s32.totalorder %s23_s20, 0  ;;  %p34_p2 = scmp.eq.s32.totalorder %s465_s15, 0 }
   0x9   : > { %p39_p3 = scmp.ne.s32.totalorder %s457_s13, %s453_s12  ;;  %p40_p4 = scmp.eq.s32.totalorder %s508_s16, 0 }
   0xa   : > { %s524_s21 = scalar_select %p24_p1, %s461_s14, %s26_s19  }
   0xb   : > { %p526_p5 = por %p34_p2, %p33_p0  ;;  %p530_p6 = por %p40_p4, %p39_p3 }
   0xc   : > { %p105_p7 = scmp.eq.s32.totalorder %s508_s16, 1  ;;  %p111_p8 = scmp.eq.s32.totalorder %s307_s17, 1 }
   0xd   : > { %p331_p10 = scmp.lt.s32.totalorder %s465_s15, 2  ;;  %s137_s26 = sand.u32 1, %s461_s14  }
   0xe   : > { %p537_p11 = por %p105_p7, %p33_p0  ;;  %p541_p12 = por %p111_p8, %p39_p3 }
   0xf   : > { %s311_s27 = sshll.u32 %s465_s15, 3  ;;  %s310_s28 = sshll.u32 %s137_s26, 3 }
  0x10   : > { %s145_s4 = scalar_lea.hbm %s624_s0, %s311_s27  ;;  %s141_s6 = scalar_lea.vmem [#allocation2], %s310_s28 }
  0x11   : > { %s147_s5 = sshll.u32 %s145_s4, 4  ;;  %s149_s7 = sshll.u32 %s141_s6, 4  ;;  %s148_s5 = int_to_ptr.hbm [resolvable:$true] %s147_s5  ;;  %s150_s7 = int_to_ptr.vmem [resolvable:$true] %s149_s7 }
  0x12   : > { %p552_p13 = pnand %p331_p10, %p526_p5  ;;  %p312_p0 = scmp.ge.s32.totalorder %s465_s15, 1 }
  0x13   : > { %p154_p1 = scmp.lt.s32.totalorder %s465_s15, 3  ;;  %s138_s9 = scalar_lea.sflag [#allocation3], %s137_s26 }
  0x14   : > { %s369_s10 = sshra.s32 %s148_s5, 4  ;;  %p373_p3 = pneg %p552_p13  ;;  %s370_s10 = int_to_ptr.hbm [resolvable:$true] %s369_s10 }
  0x15   : > { %s371_s11 = scalar_lea.hbm %s370_s10, 8  ;;  %s376_s20 = scalar_lea.hbm %s624_s0, 16 }
  0x16   : > { %p372_p2 = scmp.ne.s32.totalorder %s370_s10, %s371_s11  ;;  %p377_p5 = scmp.lt.s32.totalorder %s370_s10, %s624_s0 }
  0x17   : > { %p378_p8 = scmp.lt.s32.totalorder %s376_s20, %s371_s11 }
  0x18   : > { %p374_p4 = pnand %p373_p3, %p372_p2 }
  0x19   : > { %p379_p10 = por %p378_p8, %p377_p5 }
  0x1a   : > { %p375_p7 = pneg %p374_p4 }
  0x1c   : > { %p380_p9 = pnand %p379_p10, %p375_p7 }
  0x1e   : > { %383 = shalt.err (!%p380_p9)
}
  0x1f   : > { %326 = dma.hbm_to_vmem [thread:$0]  (!%p552_p13), %s148_s5, 128, %s150_s7, %s138_s9  }
  0x20   : > { %p155_p2 = pnand %p312_p0, %p154_p1 }
  0x21   : > { %s573_s26 = sand.u32 (!%p155_p2), 1, %s457_s13  }
  0x22   : > { %158 = sbr.rel (%p155_p2) target bundleno = 312 (0x138), region = 32  ;;  %s313_s28 = sshll.u32 (!%p155_p2), %s573_s26, 3 }
  0x23   : > { %s161_s29 = scalar_lea.sflag (!%p155_p2), [#allocation3], %s573_s26  ;;  %s164_s30 = scalar_lea.vmem (!%p155_p2), [#allocation2], %s313_s28 }
  0x27   : > { %444 = dma.done.wait (%p530_p6), %s161_s29, 128  }
  0x28   : > { %446 = vsyncadd (%p530_p6), %s161_s29, 4294967168  ;;  %v188_v0 = vld [vmem:[%s164_s30] sm:$0xff]  ;;  %s316_s23 = sshll.u32 %s508_s16, 3  ;;  %s187_s16 = scalar_lea.vmem [#allocation5], %s313_s28 }
  0x29   : > { %189 = vadd.xlane.f32.xlu0 %v188_v0  ;;  %v365_v14 = vld [vmem:[%s625_s1] ss:$0 sm:$0xff]  ;;  %s232_s10 = scalar_lea.hbm %s627_s3, %s316_s23  ;;  %s234_s11 = sshll.u32 %s187_s16, 4  ;;  %s235_s11 = int_to_ptr.vmem [resolvable:$true] %s234_s11 }
  0x2a   : > { %v366_v17 = vld [vmem:[%s626_s2] ss:$0 sm:$0xff]  ;;  %s236_s17 = sshll.u32 %s232_s10, 4  ;;  %s222_s19 = scalar_lea.sflag [#allocation4], %s573_s26  ;;  %s237_s17 = int_to_ptr.hbm [resolvable:$true] %s236_s17 }
  0x2b   : > { %s413_s20 = sshra.s32 %s237_s17, 4  ;;  %s419_s30 = scalar_lea.hbm %s627_s3, 16  ;;  %s414_s20 = int_to_ptr.hbm [resolvable:$true] %s413_s20 }
  0x2c   : > { %s415_s22 = scalar_lea.hbm %s414_s20, 8  ;;  %p420_p0 = scmp.lt.s32.totalorder %s414_s20, %s627_s3 }
  0x2d   : > { %p416_p6 = scmp.ne.s32.totalorder %s414_s20, %s415_s22  ;;  %p421_p1 = scmp.lt.s32.totalorder %s419_s30, %s415_s22 }
  0x2f   : > { %p417_p9 = pnand %p416_p6, %p537_p11  ;;  %p422_p3 = por %p421_p1, %p420_p0 }
  0x31   : > { %p418_p13 = pneg %p417_p9 }
  0x33   : > { %p423_p4 = pnand %p422_p3, %p418_p13 }
  0x9c   : > { %v190_v1 = vpop.xlane.xlu0 %189 }
  0x9d   : > { %v191_v2 = vmul.f32 0.0078125, %v190_v1 }
  0x9f   : > { %v192_v3 = vsub.f32 %v188_v0, %v191_v2 }
  0xa1   : > { %v193_v4 = vmul.f32 %v192_v3, %v192_v3 }
  0xa3   : > { %194 = vadd.xlane.f32.xlu0 %v193_v4 }
 0x116   : > { %v195_v5 = vpop.xlane.xlu0 %194 }
 0x117   : > { %v196_v6 = vmul.f32 0.0078125, %v195_v5 }
 0x119   : > { %v197_v7 = vadd.f32 1e-05, %v196_v6 }
 0x11b   : > { %367 = vrsqrt.f32 %v197_v7  ;;  %vm204_vm1 = vweird.f32 %v197_v7 }
 0x121   : > { %v368_v8 = vpop.eup %367 }
 0x122   : > { %v199_v9 = vmul.f32 %v368_v8, %v197_v7  ;;  %vm205_vm0 = vweird.f32 %v368_v8 }
 0x123   : > { %vm206_vm2 = vmor %vm204_vm1, %vm205_vm0 }
 0x124   : > { %v200_v10 = vmul.f32 %v368_v8, %v199_v9 }
 0x126   : > { %v201_v11 = vmul.f32 0.5, %v200_v10 }
 0x128   : > { %v202_v12 = vsub.f32 1.5, %v201_v11 }
 0x12a   : > { %v203_v13 = vmul.f32 %v368_v8, %v202_v12 }
 0x12c   : > { %v207_v15 = vsel %vm206_vm2, %v368_v8, %v203_v13 }
 0x12d   : > { %v208_v16 = vmul.f32 %v207_v15, %v192_v3 }
 0x12f   : > { %v213_v18 = vmul.f32 %v365_v14, %v208_v16 }
 0x131   : > { %v218_v19 = vadd.f32 %v366_v17, %v213_v18 }
 0x133   : > { %v219_v20 = vadd.f32 %v218_v19, %v188_v0 }
 0x135   : > { %220 = vst [vmem:[%s187_s16] sm:$0xff] %v219_v20 }
 0x136   : > { %426 = shalt.err (!%p423_p4)
}
 0x137   : > { %321 = dma.vmem_to_hbm [thread:$0]  (%p537_p11), %s235_s11, 128, %s237_s17, %s222_s19  }
 0x138 PF: > { %s248_s26 = sand.u32 1, %s453_s12   ;;  %p633_p7 = scmp.ge.s32.totalorder %s465_s15, 2 }
 0x139   : > { %s249_s4 = scalar_lea.sflag [#allocation4], %s248_s26 }
 0x13a   : > { %p328_p5 = pnand %p633_p7, %p541_p12 }
 0x13c   : > { %p329_p8 = pneg %p328_p5 }
 0x13e   : > { %448 = dma.done.wait (%p329_p8), %s249_s4, 128  }
 0x13f   : > { %450 = vsyncadd (%p329_p8), %s249_s4, 4294967168  ;;  %p16_p10 = scmp.ge.s32.totalorder %s512_s18, 4   ;;  %s634_s12 = smov %s457_s13 }
 0x140   : > { %s635_s13 = smov %s461_s14  ;;  %s636_s14 = smov %s524_s21 }
 0x141   : > { %s637_s15 = smov %s512_s18  ;;  %18 = sbr.rel (!%p16_p10) target bundleno = 5 (0x5), region = 77 }
 0x146   :  { %255 = vsyncpa [#allocation3], 1 }
 0x147   :  { %257 = vsyncpa [#allocation3 + $0x1], 1 }
 0x148   :  { %258 = vsyncpa [#allocation4], 1 }
 0x149   :  { %260 = vsyncpa [#allocation4 + $0x1], 1 }

</bundles_post_ra>
